<compile_context>
chip_gen: v7x
topology: tpu7x:2x2x1
jax: 0.10.0
libtpu: 0.0.40
codegen_flags: <defaults>
</compile_context>

<pallas_src>
import functools

import jax
import jax.numpy as jnp
from jax.experimental import pallas as pl
from jax.experimental.pallas import tpu as pltpu


def detection_head_kernel(x_ref, w1_ref, b1_ref, w2_ref, b2_ref,
                          wh_ref, bh_ref, out_ref, acc_ref):
    k = pl.program_id(1)

    @pl.when(k == 0)
    def _():
        acc_ref[...] = jnp.zeros_like(acc_ref)

    # fc1 partial product for this K slice: bf16 MXU matmul, f32 accumulation.
    acc_ref[...] += jnp.dot(x_ref[...].astype(w1_ref.dtype), w1_ref[...],
                            preferred_element_type=jnp.float32)

    @pl.when(k == pl.num_programs(1) - 1)
    def _():
        # fc1 epilogue (bias + ReLU) in f32
        h1 = jnp.maximum(acc_ref[...] + b1_ref[...], 0.0)
        # fc2 + ReLU
        h2 = jnp.dot(h1.astype(w2_ref.dtype), w2_ref[...],
                     preferred_element_type=jnp.float32)
        h2 = jnp.maximum(h2 + b2_ref[...], 0.0)
        # fused (cls || bbox) head, zero-padded to a lane-dense output width
        out = jnp.dot(h2.astype(wh_ref.dtype), wh_ref[...],
                      preferred_element_type=jnp.float32)
        out_ref[...] = (out + bh_ref[...]).astype(out_ref.dtype)


def _round_up(x, m):
    return ((x + m - 1) // m) * m


def _pick_block_k(k_aligned, max_block_k):
    """Largest multiple of 128 that divides k_aligned and is <= max_block_k."""
    if k_aligned <= max_block_k:
        return k_aligned
    for m in range(max_block_k // 128, 0, -1):
        cand = m * 128
        if k_aligned % cand == 0:
            return cand
    return 128


def pack_params(params, *, max_block_k=3136):
    """One-time parameter packing done OUTSIDE the per-call forward.

    - casts matmul weights to bf16,
    - fuses cls/bbox into one head weight padded to 128 output lanes,
    - zero-pads flatten_dim to a multiple of 128 (lane-dense K),
    - picks the static K tile (block_k).
    """
    w1, b1, w2, b2, wc, bc, wb, bb = params
    flatten_dim, fc_dim = w1.shape
    n_cls = wc.shape[1]
    n_box = wb.shape[1]
    head_dim = n_cls + n_box
    head_pad = _round_up(head_dim, 128)

    k_aligned = _round_up(flatten_dim, 128)
    block_k = _pick_block_k(k_aligned, max_block_k)

    w1_p = jnp.pad(w1, ((0, k_aligned - flatten_dim), (0, 0))).astype(jnp.bfloat16)
    w2_p = w2.astype(jnp.bfloat16)
    wh_p = jnp.pad(jnp.concatenate([wc, wb], axis=1),
                   ((0, 0), (0, head_pad - head_dim))).astype(jnp.bfloat16)
    b1_p = b1.reshape(1, fc_dim).astype(jnp.float32)
    b2_p = b2.reshape(1, fc_dim).astype(jnp.float32)
    bh_p = jnp.pad(jnp.concatenate([bc, bb], axis=0),
                   (0, head_pad - head_dim)).reshape(1, head_pad).astype(jnp.float32)

    packed = (w1_p, b1_p, w2_p, b2_p, wh_p, bh_p)
    meta = dict(n_cls=int(n_cls), n_box=int(n_box), block_k=int(block_k))
    return packed, meta


def _invariant_spec(shape):
    """Grid-invariant parameter block, single-buffered (no 2x VMEM waste)."""
    if hasattr(pl, "Buffered"):
        try:
            return pl.BlockSpec(shape, lambda i, k: (0, 0),
                                pipeline_mode=pl.Buffered(1))
        except TypeError:
            pass
    return pl.BlockSpec(shape, lambda i, k: (0, 0))


@functools.partial(jax.jit,
                   static_argnames=("n_cls", "n_box", "block_k", "block_n"))
def detection_head_forward(x_nchw, packed, *, n_cls, n_box, block_k, block_n=256):
    """x_nchw: (N, C, Ph, Pw) float32; packed from pack_params().

    Returns (cls_score (N, n_cls), bbox_pred (N, n_box)).
    """
    w1, b1, w2, b2, wh, bh = packed
    N = x_nchw.shape[0]
    flatten_dim = x_nchw.shape[1] * x_nchw.shape[2] * x_nchw.shape[3]
    k_pad, fc_dim = w1.shape
    head_pad = wh.shape[1]
    head_dim = n_cls + n_box
    num_k = k_pad // block_k

    # Clamp the row tile to the padded batch so tiny batches don't over-pad.
    bn = max(128, min(block_n, _round_up(max(N, 1), 128)))
    n_pad = _round_up(max(N, 1), bn)

    # flatten exactly like x.view(-1, flatten_dim) on contiguous NCHW input;
    # x stays f32 (cast to bf16 happens inside the kernel).
    x_flat = x_nchw.reshape(N, flatten_dim)
    x_flat = jnp.pad(x_flat, ((0, n_pad - N), (0, k_pad - flatten_dim)))

    # VMEM working-set estimate (single-buffered invariants counted once).
    f32, bf16 = 4, 2
    w1_bufs = 2 if num_k > 1 else 1
    working_set = (
        2 * bn * block_k * f32              # x tile (f32), double-buffered
        + 2 * bn * head_pad * f32           # out tile, double-buffered
        + w1_bufs * block_k * fc_dim * bf16  # w1 K block
        + fc_dim * fc_dim * bf16            # w2 (resident, single-buffered)
        + fc_dim * head_pad * bf16          # fused head W (resident)
        + (2 * fc_dim + head_pad) * f32     # biases
        + bn * fc_dim * f32                 # fc1 accumulator scratch
        + 2 * bn * fc_dim * f32             # live h1/h2 intermediates
    )
    try:
        phys_vmem = int(pltpu.get_tpu_info().vmem_capacity_bytes)
    except Exception:  # non-TPU / older runtime fallback
        phys_vmem = 64 * 1024 * 1024
    cap = int(phys_vmem * 0.8)
    vmem_limit = int(min(cap, max(int(working_set * 1.5), 32 * 1024 * 1024)))

    if num_k > 1:
        w1_spec = pl.BlockSpec((block_k, fc_dim), lambda i, k: (k, 0))
    else:
        w1_spec = _invariant_spec((block_k, fc_dim))

    out = pl.pallas_call(
        detection_head_kernel,
        out_shape=jax.ShapeDtypeStruct((n_pad, head_pad), jnp.float32),
        grid_spec=pltpu.PrefetchScalarGridSpec(
            num_scalar_prefetch=0,
            grid=(n_pad // bn, num_k),
            in_specs=[
                pl.BlockSpec((bn, block_k), lambda i, k: (i, k)),  # x rows/K slice
                w1_spec,                                           # w1 K slice
                _invariant_spec((1, fc_dim)),                      # b1
                _invariant_spec((fc_dim, fc_dim)),                 # w2
                _invariant_spec((1, fc_dim)),                      # b2
                _invariant_spec((fc_dim, head_pad)),               # fused head W
                _invariant_spec((1, head_pad)),                    # fused head b
            ],
            out_specs=pl.BlockSpec((bn, head_pad), lambda i, k: (i, 0)),
            scratch_shapes=[pltpu.VMEM((bn, fc_dim), jnp.float32)],
        ),
        compiler_params=pltpu.CompilerParams(
            dimension_semantics=("parallel", "arbitrary"),
            vmem_limit_bytes=vmem_limit,
        ),
    )(x_flat, w1, b1, w2, b2, wh, bh)

    cls_score = out[:N, :n_cls]
    bbox_pred = out[:N, n_cls:head_dim]
    return cls_score, bbox_pred


def init_params(key, in_channels, pooled_h, pooled_w, fc_dim, num_classes):
    """Deterministic synthetic parameters (shapes match the PyTorch module).

    Linear weights stored as (in_features, out_features) so the kernel computes
    row-major x @ W + b.
    """
    flatten_dim = in_channels * pooled_h * pooled_w
    ks = jax.random.split(key, 8)

    def lin(kw, kb, fan_in, fan_out):
        bound = 1.0 / jnp.sqrt(fan_in)
        w = jax.random.uniform(kw, (fan_in, fan_out), jnp.float32, -bound, bound)
        b = jax.random.uniform(kb, (fan_out,), jnp.float32, -bound, bound)
        return w, b

    w1, b1 = lin(ks[0], ks[1], flatten_dim, fc_dim)
    w2, b2 = lin(ks[2], ks[3], fc_dim, fc_dim)
    wc, bc = lin(ks[4], ks[5], fc_dim, num_classes + 1)
    wb, bb = lin(ks[6], ks[7], fc_dim, 4 * num_classes)
    return (w1, b1, w2, b2, wc, bc, wb, bb)


def reference_forward(x_nchw, params):
    """Plain-JAX f32 reference mirroring the PyTorch forward."""
    w1, b1, w2, b2, wc, bc, wb, bb = params
    x = x_nchw.reshape(x_nchw.shape[0], -1)
    x = jax.nn.relu(x @ w1 + b1)
    x = jax.nn.relu(x @ w2 + b2)
    return x @ wc + bc, x @ wb + bb


if __name__ == "__main__":
    key = jax.random.PRNGKey(0)
    kx1, kp1, kx2, kp2 = jax.random.split(key, 4)

    # Config 1: module-like small shapes. flatten_dim=36 -> one lane-dense
    # 128-wide K block; 200 rows padded to a single 256-row tile.
    N, C, PH, PW = 200, 4, 3, 3
    FC_DIM, NUM_CLASSES = 128, 1
    x = jax.random.normal(kx1, (N, C, PH, PW), jnp.float32)
    params = init_params(kp1, C, PH, PW, FC_DIM, NUM_CLASSES)
    packed, meta = pack_params(params)
    cls_score, bbox_pred = detection_head_forward(
        x, packed, n_cls=meta["n_cls"], n_box=meta["n_box"],
        block_k=meta["block_k"])
    jax.block_until_ready((cls_score, bbox_pred))

    cls_ref, bbox_ref = reference_forward(x, params)
    assert cls_score.shape == (N, NUM_CLASSES + 1), cls_score.shape
    assert bbox_pred.shape == (N, 4 * NUM_CLASSES), bbox_pred.shape
    # bf16 MXU operands with f32 accumulation -> loose tolerance
    assert jnp.allclose(cls_score, cls_ref, atol=2e-2, rtol=2e-2)
    assert jnp.allclose(bbox_pred, bbox_ref, atol=2e-2, rtol=2e-2)

    # Config 2: exercise the K-tiled accumulator path (flatten_dim=256 forced
    # into two 128-wide K blocks) and the small-batch row-tile clamp.
    N2, C2, PH2, PW2 = 50, 4, 8, 8
    x2 = jax.random.normal(kx2, (N2, C2, PH2, PW2), jnp.float32)
    params2 = init_params(kp2, C2, PH2, PW2, FC_DIM, NUM_CLASSES)
    packed2, meta2 = pack_params(params2, max_block_k=128)
    cls2, bbox2 = detection_head_forward(
        x2, packed2, n_cls=meta2["n_cls"], n_box=meta2["n_box"],
        block_k=meta2["block_k"])
    jax.block_until_ready((cls2, bbox2))

    cls2_ref, bbox2_ref = reference_forward(x2, params2)
    assert cls2.shape == (N2, NUM_CLASSES + 1), cls2.shape
    assert bbox2.shape == (N2, 4 * NUM_CLASSES), bbox2.shape
    assert jnp.allclose(cls2, cls2_ref, atol=2e-2, rtol=2e-2)
    assert jnp.allclose(bbox2, bbox2_ref, atol=2e-2, rtol=2e-2)

    print("KERNEL_OK")
</pallas_src>

<mosaic_0001>
module attributes {stable_mosaic.version = 11 : i64} {
  func.func @detection_head_kernel(%arg0: i32, %arg1: i32, %arg2: memref<256x128xf32, #tpu.memory_space<vmem>>, %arg3: memref<128x128xbf16, #tpu.memory_space<vmem>>, %arg4: memref<1x128xf32, #tpu.memory_space<vmem>>, %arg5: memref<128x128xbf16, #tpu.memory_space<vmem>>, %arg6: memref<1x128xf32, #tpu.memory_space<vmem>>, %arg7: memref<128x128xbf16, #tpu.memory_space<vmem>>, %arg8: memref<1x128xf32, #tpu.memory_space<vmem>>, %arg9: memref<256x128xf32, #tpu.memory_space<vmem>>, %arg10: memref<256x128xf32, #tpu.memory_space<vmem>>) attributes {dimension_semantics = [#tpu.dimension_semantics<parallel>, #tpu.dimension_semantics<arbitrary>], iteration_bounds = array<i64: 1, 1>, scalar_prefetch = 0 : i64, scratch_operands = 1 : i64, tpu.core_type = #tpu.core_type<tc>, window_params = [{transform_indices = @transform_0, window_bounds = array<i64: 256, 128>}, {pipeline_mode = #tpu.pipeline_mode<synchronous>, transform_indices = @transform_1, window_bounds = array<i64: 128, 128>}, {pipeline_mode = #tpu.pipeline_mode<synchronous>, transform_indices = @transform_2, window_bounds = array<i64: 1, 128>}, {pipeline_mode = #tpu.pipeline_mode<synchronous>, transform_indices = @transform_3, window_bounds = array<i64: 128, 128>}, {pipeline_mode = #tpu.pipeline_mode<synchronous>, transform_indices = @transform_4, window_bounds = array<i64: 1, 128>}, {pipeline_mode = #tpu.pipeline_mode<synchronous>, transform_indices = @transform_5, window_bounds = array<i64: 128, 128>}, {pipeline_mode = #tpu.pipeline_mode<synchronous>, transform_indices = @transform_6, window_bounds = array<i64: 1, 128>}, {transform_indices = @transform_7, window_bounds = array<i64: 256, 128>}]} {
    %c0_i32 = arith.constant 0 : i32
    %0 = arith.cmpi eq, %arg1, %c0_i32 : i32
    %1 = arith.extui %0 : i1 to i32
    %c0_i32_0 = arith.constant 0 : i32
    %2 = arith.cmpi ne, %1, %c0_i32_0 : i32
    scf.if %2 {
      %cst_10 = arith.constant 0.000000e+00 : f32
      %13 = vector.broadcast %cst_10 : f32 to vector<256x128xf32>
      %c0_11 = arith.constant 0 : index
      %c0_12 = arith.constant 0 : index
      %14 = vector.load %arg10[%c0_11, %c0_12] : memref<256x128xf32, #tpu.memory_space<vmem>>, vector<256x128xf32>
      tpu.vector_store %arg10[%c0_11, %c0_12], %13 {strides = array<i32>} : memref<256x128xf32, #tpu.memory_space<vmem>>, vector<256x128xf32>,
    } else {
    }
    %c0 = arith.constant 0 : index
    %c0_1 = arith.constant 0 : index
    %3 = vector.load %arg10[%c0, %c0_1] : memref<256x128xf32, #tpu.memory_space<vmem>>, vector<256x128xf32>
    %c0_2 = arith.constant 0 : index
    %c0_3 = arith.constant 0 : index
    %4 = vector.load %arg2[%c0_2, %c0_3] : memref<256x128xf32, #tpu.memory_space<vmem>>, vector<256x128xf32>
    %5 = arith.truncf %4 : vector<256x128xf32> to vector<256x128xbf16>
    %c0_4 = arith.constant 0 : index
    %c0_5 = arith.constant 0 : index
    %6 = vector.load %arg3[%c0_4, %c0_5] : memref<128x128xbf16, #tpu.memory_space<vmem>>, vector<128x128xbf16>
    %cst = arith.constant dense<0.000000e+00> : vector<256x128xf32>
    %7 = tpu.matmul %5, %6, %cst {dimension_numbers = #tpu.dot_dimension_numbers<[1], [0], [0], [1], [0, 0, 1, 1], [], []>} : vector<256x128xbf16>, vector<128x128xbf16>, vector<256x128xf32> -> vector<256x128xf32>
    %8 = arith.addf %3, %7 : vector<256x128xf32>
    %c0_6 = arith.constant 0 : index
    %c0_7 = arith.constant 0 : index
    %9 = vector.load %arg10[%c0_6, %c0_7] : memref<256x128xf32, #tpu.memory_space<vmem>>, vector<256x128xf32>
    tpu.vector_store %arg10[%c0_6, %c0_7], %8 {strides = array<i32>} : memref<256x128xf32, #tpu.memory_space<vmem>>, vector<256x128xf32>,
    %c0_i32_8 = arith.constant 0 : i32
    %10 = arith.cmpi eq, %arg1, %c0_i32_8 : i32
    %11 = arith.extui %10 : i1 to i32
    %c0_i32_9 = arith.constant 0 : i32
    %12 = arith.cmpi ne, %11, %c0_i32_9 : i32
    scf.if %12 {
      %c0_10 = arith.constant 0 : index
      %c0_11 = arith.constant 0 : index
      %13 = vector.load %arg10[%c0_10, %c0_11] : memref<256x128xf32, #tpu.memory_space<vmem>>, vector<256x128xf32>
      %c0_12 = arith.constant 0 : index
      %c0_13 = arith.constant 0 : index
      %14 = vector.load %arg4[%c0_12, %c0_13] : memref<1x128xf32, #tpu.memory_space<vmem>>, vector<1x128xf32>
      %15 = vector.broadcast %14 : vector<1x128xf32> to vector<256x128xf32>
      %16 = arith.addf %13, %15 : vector<256x128xf32>
      %cst_14 = arith.constant 0.000000e+00 : f32
      %17 = vector.broadcast %cst_14 : f32 to vector<256x128xf32>
      %18 = arith.maximumf %16, %17 : vector<256x128xf32>
      %19 = arith.truncf %18 : vector<256x128xf32> to vector<256x128xbf16>
      %c0_15 = arith.constant 0 : index
      %c0_16 = arith.constant 0 : index
      %20 = vector.load %arg5[%c0_15, %c0_16] : memref<128x128xbf16, #tpu.memory_space<vmem>>, vector<128x128xbf16>
      %cst_17 = arith.constant dense<0.000000e+00> : vector<256x128xf32>
      %21 = tpu.matmul %19, %20, %cst_17 {dimension_numbers = #tpu.dot_dimension_numbers<[1], [0], [0], [1], [0, 0, 1, 1], [], []>} : vector<256x128xbf16>, vector<128x128xbf16>, vector<256x128xf32> -> vector<256x128xf32>
      %c0_18 = arith.constant 0 : index
      %c0_19 = arith.constant 0 : index
      %22 = vector.load %arg6[%c0_18, %c0_19] : memref<1x128xf32, #tpu.memory_space<vmem>>, vector<1x128xf32>
      %23 = vector.broadcast %22 : vector<1x128xf32> to vector<256x128xf32>
      %24 = arith.addf %21, %23 : vector<256x128xf32>
      %cst_20 = arith.constant 0.000000e+00 : f32
      %25 = vector.broadcast %cst_20 : f32 to vector<256x128xf32>
      %26 = arith.maximumf %24, %25 : vector<256x128xf32>
      %27 = arith.truncf %26 : vector<256x128xf32> to vector<256x128xbf16>
      %c0_21 = arith.constant 0 : index
      %c0_22 = arith.constant 0 : index
      %28 = vector.load %arg7[%c0_21, %c0_22] : memref<128x128xbf16, #tpu.memory_space<vmem>>, vector<128x128xbf16>
      %cst_23 = arith.constant dense<0.000000e+00> : vector<256x128xf32>
      %29 = tpu.matmul %27, %28, %cst_23 {dimension_numbers = #tpu.dot_dimension_numbers<[1], [0], [0], [1], [0, 0, 1, 1], [], []>} : vector<256x128xbf16>, vector<128x128xbf16>, vector<256x128xf32> -> vector<256x128xf32>
      %c0_24 = arith.constant 0 : index
      %c0_25 = arith.constant 0 : index
      %30 = vector.load %arg8[%c0_24, %c0_25] : memref<1x128xf32, #tpu.memory_space<vmem>>, vector<1x128xf32>
      %31 = vector.broadcast %30 : vector<1x128xf32> to vector<256x128xf32>
      %32 = arith.addf %29, %31 : vector<256x128xf32>
      %c0_26 = arith.constant 0 : index
      %c0_27 = arith.constant 0 : index
      %33 = vector.load %arg9[%c0_26, %c0_27] : memref<256x128xf32, #tpu.memory_space<vmem>>, vector<256x128xf32>
      tpu.vector_store %arg9[%c0_26, %c0_27], %32 {strides = array<i32>} : memref<256x128xf32, #tpu.memory_space<vmem>>, vector<256x128xf32>,
    } else {
    }
    return
  }
  func.func @transform_0(%arg0: i32, %arg1: i32) -> (i32, i32) {
    %c0_i32 = arith.constant 0 : i32
    return %arg0, %arg1 : i32, i32
  }
  func.func @transform_1(%arg0: i32, %arg1: i32) -> (i32, i32) {
    %c0_i32 = arith.constant 0 : i32
    %c0_i32_0 = arith.constant 0 : i32
    %c0_i32_1 = arith.constant 0 : i32
    return %c0_i32, %c0_i32_0 : i32, i32
  }
  func.func @transform_2(%arg0: i32, %arg1: i32) -> (i32, i32) {
    %c0_i32 = arith.constant 0 : i32
    %c0_i32_0 = arith.constant 0 : i32
    %c0_i32_1 = arith.constant 0 : i32
    return %c0_i32, %c0_i32_0 : i32, i32
  }
  func.func @transform_3(%arg0: i32, %arg1: i32) -> (i32, i32) {
    %c0_i32 = arith.constant 0 : i32
    %c0_i32_0 = arith.constant 0 : i32
    %c0_i32_1 = arith.constant 0 : i32
    return %c0_i32, %c0_i32_0 : i32, i32
  }
  func.func @transform_4(%arg0: i32, %arg1: i32) -> (i32, i32) {
    %c0_i32 = arith.constant 0 : i32
    %c0_i32_0 = arith.constant 0 : i32
    %c0_i32_1 = arith.constant 0 : i32
    return %c0_i32, %c0_i32_0 : i32, i32
  }
  func.func @transform_5(%arg0: i32, %arg1: i32) -> (i32, i32) {
    %c0_i32 = arith.constant 0 : i32
    %c0_i32_0 = arith.constant 0 : i32
    %c0_i32_1 = arith.constant 0 : i32
    return %c0_i32, %c0_i32_0 : i32, i32
  }
  func.func @transform_6(%arg0: i32, %arg1: i32) -> (i32, i32) {
    %c0_i32 = arith.constant 0 : i32
    %c0_i32_0 = arith.constant 0 : i32
    %c0_i32_1 = arith.constant 0 : i32
    return %c0_i32, %c0_i32_0 : i32, i32
  }
  func.func @transform_7(%arg0: i32, %arg1: i32) -> (i32, i32) {
    %c0_i32 = arith.constant 0 : i32
    %c0_i32_0 = arith.constant 0 : i32
    return %arg0, %c0_i32 : i32, i32
  }
}

</mosaic_0001>

<bundles_post_ra>
// kernel: detection_head_forward.1
= control target key start
LH: loop header
LB: loop body
LE: loop exit
PB: predicated region body
PF: predicated region fallthrough
CT: control target
= control target key end

     0   :  { %s1809_s1 = inlined_call_operand.vmem [shape: bf16[128,128], index: 1, kind: input, shape index: {}]   ;;  %s1810_s0 = inlined_call_operand.vmem [shape: f32[256,128], index: 0, kind: input, shape index: {}]   ;;  %s1811_s3 = inlined_call_operand.vmem [shape: bf16[128,128], index: 3, kind: input, shape index: {}]   ;;  %s1812_s5 = inlined_call_operand.vmem [shape: bf16[128,128], index: 5, kind: input, shape index: {}]   ;;  %s1813_s2 = inlined_call_operand.vmem [shape: f32[1,128], index: 2, kind: input, shape index: {}]   ;;  %s1814_s4 = inlined_call_operand.vmem [shape: f32[1,128], index: 4, kind: input, shape index: {}]   ;;  %s1815_s6 = inlined_call_operand.vmem [shape: f32[1,128], index: 6, kind: input, shape index: {}]   ;;  %s1816_s7 = inlined_call_operand.vmem [shape: f32[256,128], index: 7, kind: output, shape index: {}]  }
   0x1   :  { %v1361_v0 = vld [vmem:[%s1809_s1] sm:$0xff]   ;;  %v1362_v1 = vld [vmem:[%s1809_s1 + $0x8] sm:$0xff]   ;;  %v1363_v2 = vld [vmem:[%s1809_s1 + $0x10] sm:$0xff]  }
   0x2   :  { %1201 = vmatprep.subr.bf16.mxu0 %v1361_v0  ;;  %1345 = vmatprep.subr.bf16.mxu1 %v1361_v0  ;;  %v1364_v3 = vld [vmem:[%s1809_s1 + $0x18] sm:$0xff]   ;;  %v95_v4 = vld [vmem:[%s1810_s0] sm:$0xff]  ;;  %v96_v5 = vld [vmem:[%s1810_s0 + $0x8] sm:$0xff] }
   0x3   :  { %1202 = vmatpush3.bf16.msra.mxu0 %v1361_v0  ;;  %1353 = vmatpush3.bf16.msra.mxu1 %v1361_v0  ;;  %v127_v6 = vpack.c.bf16 %v96_v5, %v95_v4  ;;  %v1365_v7 = vld [vmem:[%s1809_s1 + $0x20] sm:$0xff]   ;;  %v112_v9 = vld [vmem:[%s1810_s0 + $0x88] sm:$0xff]  ;;  %v1367_v12 = vld [vmem:[%s1809_s1 + $0x30] sm:$0xff]  }
   0x4   :  { %1203 = vmatprep.subr.bf16.mxu0 %v1362_v1  ;;  %1346 = vmatprep.subr.bf16.mxu1 %v1362_v1  ;;  %v111_v8 = vld [vmem:[%s1810_s0 + $0x80] sm:$0xff]  ;;  %v1366_v11 = vld [vmem:[%s1809_s1 + $0x28] sm:$0xff]   ;;  %v1368_v13 = vld [vmem:[%s1809_s1 + $0x38] sm:$0xff]  }
   0x5   :  { %1217 = vmatprep.mubr.bf16.mxu0 %v127_v6  ;;  %v135_v10 = vpack.c.bf16 %v112_v9, %v111_v8  ;;  %v97_v14 = vld [vmem:[%s1810_s0 + $0x10] sm:$0xff]  ;;  %v98_v15 = vld [vmem:[%s1810_s0 + $0x18] sm:$0xff]  ;;  %v99_v16 = vld [vmem:[%s1810_s0 + $0x20] sm:$0xff] }
   0x6   :  { %v100_v17 = vld [vmem:[%s1810_s0 + $0x28] sm:$0xff]  ;;  %v113_v18 = vld [vmem:[%s1810_s0 + $0x90] sm:$0xff]  ;;  %v114_v19 = vld [vmem:[%s1810_s0 + $0x98] sm:$0xff]  ;;  %v128_v23 = vpack.c.bf16 %v98_v15, %v97_v14 }
   0x7   :  { %1204 = vmatpush3.bf16.msra.mxu0 %v1362_v1  ;;  %1354 = vmatpush3.bf16.msra.mxu1 %v1362_v1  ;;  %v115_v20 = vld [vmem:[%s1810_s0 + $0xa0] sm:$0xff]  ;;  %v116_v21 = vld [vmem:[%s1810_s0 + $0xa8] sm:$0xff]  ;;  %v129_v24 = vpack.c.bf16 %v100_v17, %v99_v16  ;;  %v136_v25 = vpack.c.bf16 %v114_v19, %v113_v18  ;;  %v101_v28 = vld [vmem:[%s1810_s0 + $0x30] sm:$0xff] }
   0x8   :  { %1205 = vmatprep.subr.bf16.mxu0 %v1363_v2  ;;  %1347 = vmatprep.subr.bf16.mxu1 %v1363_v2  ;;  %v1369_v22 = vld [vmem:[%s1811_s3] sm:$0xff]   ;;  %v137_v26 = vpack.c.bf16 %v116_v21, %v115_v20  ;;  %v1370_v27 = vld [vmem:[%s1811_s3 + $0x8] sm:$0xff]   ;;  %v102_v29 = vld [vmem:[%s1810_s0 + $0x38] sm:$0xff] }
   0x9   :  { %1233 = vmatprep.mubr.bf16.mxu1 %v135_v10  ;;  %v103_v30 = vld [vmem:[%s1810_s0 + $0x40] sm:$0xff]  ;;  %v104_v31 = vld [vmem:[%s1810_s0 + $0x48] sm:$0xff]  ;;  %v117_v32 = vld [vmem:[%s1810_s0 + $0xb0] sm:$0xff]  ;;  %v130_v37 = vpack.c.bf16 %v102_v29, %v101_v28 }
   0xa   :  { %v118_v33 = vld [vmem:[%s1810_s0 + $0xb8] sm:$0xff]  ;;  %v119_v34 = vld [vmem:[%s1810_s0 + $0xc0] sm:$0xff]  ;;  %v120_v35 = vld [vmem:[%s1810_s0 + $0xc8] sm:$0xff]  ;;  %v131_v38 = vpack.c.bf16 %v104_v31, %v103_v30 }
   0xb   :  { %1206 = vmatpush3.bf16.msra.mxu0 %v1363_v2  ;;  %1355 = vmatpush3.bf16.msra.mxu1 %v1363_v2  ;;  %v1371_v36 = vld [vmem:[%s1811_s3 + $0x10] sm:$0xff]   ;;  %v138_v39 = vpack.c.bf16 %v118_v33, %v117_v32  ;;  %v139_v40 = vpack.c.bf16 %v120_v35, %v119_v34  ;;  %v1372_v41 = vld [vmem:[%s1811_s3 + $0x18] sm:$0xff]   ;;  %v107_v44 = vld [vmem:[%s1810_s0 + $0x60] sm:$0xff] }
   0xc   :  { %1207 = vmatprep.subr.bf16.mxu0 %v1364_v3  ;;  %1348 = vmatprep.subr.bf16.mxu1 %v1364_v3  ;;  %v105_v42 = vld [vmem:[%s1810_s0 + $0x50] sm:$0xff]  ;;  %v106_v43 = vld [vmem:[%s1810_s0 + $0x58] sm:$0xff]  ;;  %v108_v45 = vld [vmem:[%s1810_s0 + $0x68] sm:$0xff] }
   0xd   :  { %v121_v46 = vld [vmem:[%s1810_s0 + $0xd0] sm:$0xff]  ;;  %v122_v47 = vld [vmem:[%s1810_s0 + $0xd8] sm:$0xff]  ;;  %v123_v48 = vld [vmem:[%s1810_s0 + $0xe0] sm:$0xff]  ;;  %v132_v51 = vpack.c.bf16 %v106_v43, %v105_v42  ;;  %v133_v52 = vpack.c.bf16 %v108_v45, %v107_v44 }
   0xe   :  { %v124_v49 = vld [vmem:[%s1810_s0 + $0xe8] sm:$0xff]  ;;  %v1373_v50 = vld [vmem:[%s1811_s3 + $0x20] sm:$0xff]   ;;  %v140_v53 = vpack.c.bf16 %v122_v47, %v121_v46  ;;  %v109_v56 = vld [vmem:[%s1810_s0 + $0x70] sm:$0xff] }
   0xf   :  { %1208 = vmatpush3.bf16.msra.mxu0 %v1364_v3  ;;  %1356 = vmatpush3.bf16.msra.mxu1 %v1364_v3  ;;  %v141_v54 = vpack.c.bf16 %v124_v49, %v123_v48  ;;  %v1374_v55 = vld [vmem:[%s1811_s3 + $0x28] sm:$0xff]   ;;  %v110_v57 = vld [vmem:[%s1810_s0 + $0x78] sm:$0xff]  ;;  %v125_v58 = vld [vmem:[%s1810_s0 + $0xf0] sm:$0xff] }
  0x10   :  { %1209 = vmatprep.subr.bf16.mxu0 %v1365_v7  ;;  %1349 = vmatprep.subr.bf16.mxu1 %v1365_v7  ;;  %v126_v59 = vld [vmem:[%s1810_s0 + $0xf8] sm:$0xff]  ;;  %v134_v60 = vpack.c.bf16 %v110_v57, %v109_v56  ;;  %v1375_v62 = vld [vmem:[%s1811_s3 + $0x30] sm:$0xff]   ;;  %v1377_v0 = vld [vmem:[%s1812_s5] sm:$0xff]  }
  0x11   :  { %v142_v61 = vpack.c.bf16 %v126_v59, %v125_v58  ;;  %v1376_v63 = vld [vmem:[%s1811_s3 + $0x38] sm:$0xff]   ;;  %v1378_v1 = vld [vmem:[%s1812_s5 + $0x8] sm:$0xff]   ;;  %v1379_v2 = vld [vmem:[%s1812_s5 + $0x10] sm:$0xff]  }
  0x12   :  { %v1380_v3 = vld [vmem:[%s1812_s5 + $0x18] sm:$0xff]   ;;  %v1381_v4 = vld [vmem:[%s1812_s5 + $0x20] sm:$0xff]   ;;  %v1382_v5 = vld [vmem:[%s1812_s5 + $0x28] sm:$0xff]  }
  0x13   :  { %1210 = vmatpush3.bf16.msra.mxu0 %v1365_v7  ;;  %1357 = vmatpush3.bf16.msra.mxu1 %v1365_v7  ;;  %v1590_v6 = vld [vmem:[%s1813_s2] ss:$0 sm:$0xff] }
  0x14   :  { %1211 = vmatprep.subr.bf16.mxu0 %v1366_v11  ;;  %1350 = vmatprep.subr.bf16.mxu1 %v1366_v11 }
  0x17   :  { %1212 = vmatpush3.bf16.msra.mxu0 %v1366_v11  ;;  %1358 = vmatpush3.bf16.msra.mxu1 %v1366_v11 }
  0x18   :  { %1213 = vmatprep.subr.bf16.mxu0 %v1367_v12  ;;  %1351 = vmatprep.subr.bf16.mxu1 %v1367_v12 }
  0x1b   :  { %1214 = vmatpush3.bf16.msra.mxu0 %v1367_v12  ;;  %1359 = vmatpush3.bf16.msra.mxu1 %v1367_v12 }
  0x1c   :  { %1215 = vmatprep.subr.bf16.mxu0 %v1368_v13  ;;  %1352 = vmatprep.subr.bf16.mxu1 %v1368_v13 }
  0x1f   :  { %1216 = vmatpush3.bf16.msra.mxu0 %v1368_v13  ;;  %1360 = vmatpush3.bf16.msra.mxu1 %v1368_v13 }
  0x20   :  { %1249 = vmatprep.subr.bf16.mxu1 %v1369_v22  ;;  %1297 = vmatprep.subr.bf16.mxu0 %v1377_v0 }
  0x22   :  { %1218 = vmatmul.mubr.bf16.vlgmr.msra.gmra.mrb[0].mxu0 %v128_v23  ;;  %1234 = vmatmul.mubr.bf16.vlgmr.msra.gmra.mrb[0].mxu1 %v136_v25 }
  0x23   :  { %1221 = vmatprep.mubr.bf16.mxu0 %v129_v24  ;;  %1237 = vmatprep.mubr.bf16.mxu1 %v137_v26 }
  0x24   :  { %1250 = vmatpush3.bf16.msra.mxu1 %v1369_v22  ;;  %1298 = vmatpush3.bf16.msra.mxu0 %v1377_v0 }
  0x25   :  { %1251 = vmatprep.subr.bf16.mxu1 %v1370_v27  ;;  %1299 = vmatprep.subr.bf16.mxu0 %v1378_v1 }
  0x28   :  { %1252 = vmatpush3.bf16.msra.mxu1 %v1370_v27  ;;  %1300 = vmatpush3.bf16.msra.mxu0 %v1378_v1 }
  0x29   :  { %1253 = vmatprep.subr.bf16.mxu1 %v1371_v36  ;;  %1301 = vmatprep.subr.bf16.mxu0 %v1379_v2 }
  0x2a   :  { %1222 = vmatmul.mubr.bf16.gmra.mrb[4].mxu0 %v130_v37  ;;  %1238 = vmatmul.mubr.bf16.gmra.mrb[4].mxu1 %v138_v39 }
  0x2b   :  { %1225 = vmatprep.mubr.bf16.mxu0 %v131_v38  ;;  %1241 = vmatprep.mubr.bf16.mxu1 %v139_v40 }
  0x2c   :  { %1254 = vmatpush3.bf16.msra.mxu1 %v1371_v36  ;;  %1302 = vmatpush3.bf16.msra.mxu0 %v1379_v2 }
  0x2d   :  { %1255 = vmatprep.subr.bf16.mxu1 %v1372_v41  ;;  %1303 = vmatprep.subr.bf16.mxu0 %v1380_v3 }
  0x30   :  { %1256 = vmatpush3.bf16.msra.mxu1 %v1372_v41  ;;  %1304 = vmatpush3.bf16.msra.mxu0 %v1380_v3 }
  0x31   :  { %1257 = vmatprep.subr.bf16.mxu1 %v1373_v50  ;;  %1305 = vmatprep.subr.bf16.mxu0 %v1381_v4 }
  0x32   :  { %1226 = vmatmul.mubr.bf16.gmra.mrb[8].mxu0 %v132_v51  ;;  %1242 = vmatmul.mubr.bf16.gmra.mrb[8].mxu1 %v140_v53 }
  0x33   :  { %1229 = vmatprep.mubr.bf16.mxu0 %v133_v52  ;;  %1245 = vmatprep.mubr.bf16.mxu1 %v141_v54 }
  0x34   :  { %1258 = vmatpush3.bf16.msra.mxu1 %v1373_v50  ;;  %1306 = vmatpush3.bf16.msra.mxu0 %v1381_v4 }
  0x35   :  { %1259 = vmatprep.subr.bf16.mxu1 %v1374_v55  ;;  %1307 = vmatprep.subr.bf16.mxu0 %v1382_v5 }
  0x38   :  { %1260 = vmatpush3.bf16.msra.mxu1 %v1374_v55  ;;  %1308 = vmatpush3.bf16.msra.mxu0 %v1382_v5 }
  0x39   :  { %1261 = vmatprep.subr.bf16.mxu1 %v1375_v62 }
  0x3a   :  { %1230 = vmatmul.mubr.bf16.gmra.mrb[12].mxu0 %v134_v60  ;;  %1246 = vmatmul.mubr.bf16.gmra.mrb[12].mxu1 %v142_v61 }
  0x3c   :  { %1262 = vmatpush3.bf16.msra.mxu1 %v1375_v62 }
  0x3d   :  { %1263 = vmatprep.subr.bf16.mxu1 %v1376_v63 }
  0x40   :  { %1264 = vmatpush3.bf16.msra.mxu1 %v1376_v63 }
  0xf5   :  { %v1219_v7 = vpop.f32.mrb[0].mxu0  ;;  %v1235_v10 = vpop.f32.mrb[0].mxu1 }
  0xf6   :  { %v476_v8 = vadd.f32 %v1219_v7, %v1590_v6  ;;  %v241_v9 = vpop.f32.mrb[1].mxu0  ;;  %v492_v13 = vadd.f32 %v1235_v10, %v1590_v6  ;;  %v305_v14 = vpop.f32.mrb[1].mxu1 }
  0xf7   :  { %v474_v11 = vadd.f32 %v1590_v6, %v241_v9  ;;  %v1220_v12 = vpop.f32.mrb[2].mxu0  ;;  %v490_v17 = vadd.f32 %v1590_v6, %v305_v14  ;;  %v1236_v18 = vpop.f32.mrb[2].mxu1 }
  0xf8   :  { %v477_v15 = vadd.f32 %v1220_v12, %v1590_v6  ;;  %v244_v16 = vpop.f32.mrb[3].mxu0  ;;  %v524_v20 = vmax.f32 %v492_v13, 0.0  ;;  %v493_v21 = vadd.f32 %v1236_v18, %v1590_v6  ;;  %v308_v22 = vpop.f32.mrb[3].mxu1  ;;  %v508_v23 = vmax.f32 %v476_v8, 0.0 }
  0xf9   :  { %v475_v19 = vadd.f32 %v1590_v6, %v244_v16  ;;  %v522_v25 = vmax.f32 %v490_v17, 0.0  ;;  %v491_v26 = vadd.f32 %v1590_v6, %v308_v22  ;;  %v506_v27 = vmax.f32 %v474_v11, 0.0 }
  0xfa   :  { %v509_v24 = vmax.f32 %v477_v15, 0.0  ;;  %v525_v29 = vmax.f32 %v493_v21, 0.0 }
  0xfb   :  { %v507_v28 = vmax.f32 %v475_v19, 0.0  ;;  %v523_v31 = vmax.f32 %v491_v26, 0.0 }
  0xfc   :  { %v539_v30 = vpack.c.bf16 %v509_v24, %v508_v23  ;;  %v1600_v34 = vpack.c.bf16 %v525_v29, %v524_v20 }
  0xfd   :  { %v538_v32 = vpack.c.bf16 %v507_v28, %v506_v27  ;;  %v1223_v33 = vpop.f32.mrb[4].mxu0  ;;  %v1603_v37 = vpack.c.bf16 %v523_v31, %v522_v25  ;;  %v1239_v38 = vpop.f32.mrb[4].mxu1 }
  0xfe   :  { %v480_v35 = vadd.f32 %v1223_v33, %v1590_v6  ;;  %v257_v36 = vpop.f32.mrb[5].mxu0  ;;  %v496_v41 = vadd.f32 %v1239_v38, %v1590_v6  ;;  %v321_v42 = vpop.f32.mrb[5].mxu1 }
  0xff   :  { %v478_v39 = vadd.f32 %v1590_v6, %v257_v36  ;;  %v1224_v40 = vpop.f32.mrb[6].mxu0  ;;  %1265 = vmatprep.mubr.bf16.mxu1 %v538_v32  ;;  %v494_v45 = vadd.f32 %v1590_v6, %v321_v42  ;;  %v1240_v46 = vpop.f32.mrb[6].mxu1 }
 0x100   :  { %v481_v43 = vadd.f32 %v1224_v40, %v1590_v6  ;;  %v260_v44 = vpop.f32.mrb[7].mxu0  ;;  %1266 = vmatmul.mubr.bf16.vlgmr.msra.gmra.mrb[16].mxu1 %v539_v30  ;;  %v528_v48 = vmax.f32 %v496_v41, 0.0  ;;  %v497_v49 = vadd.f32 %v1240_v46, %v1590_v6  ;;  %v324_v50 = vpop.f32.mrb[7].mxu1  ;;  %v512_v51 = vmax.f32 %v480_v35, 0.0 }
 0x101   :  { %v479_v47 = vadd.f32 %v1590_v6, %v260_v44  ;;  %v526_v53 = vmax.f32 %v494_v45, 0.0  ;;  %v495_v54 = vadd.f32 %v1590_v6, %v324_v50  ;;  %v510_v55 = vmax.f32 %v478_v39, 0.0 }
 0x102   :  { %v513_v52 = vmax.f32 %v481_v43, 0.0  ;;  %v529_v57 = vmax.f32 %v497_v49, 0.0 }
 0x103   :  { %v511_v56 = vmax.f32 %v479_v47, 0.0  ;;  %v527_v59 = vmax.f32 %v495_v54, 0.0 }
 0x104   :  { %v541_v58 = vpack.c.bf16 %v513_v52, %v512_v51  ;;  %v1612_v62 = vpack.c.bf16 %v529_v57, %v528_v48 }
 0x105   :  { %v540_v60 = vpack.c.bf16 %v511_v56, %v510_v55  ;;  %v1227_v61 = vpop.f32.mrb[8].mxu0  ;;  %v548_v1 = vpack.c.bf16 %v527_v59, %v526_v53  ;;  %v1243_v2 = vpop.f32.mrb[8].mxu1 }
 0x106   :  { %v484_v63 = vadd.f32 %v1227_v61, %v1590_v6  ;;  %v273_v0 = vpop.f32.mrb[9].mxu0  ;;  %v500_v5 = vadd.f32 %v1243_v2, %v1590_v6  ;;  %v337_v7 = vpop.f32.mrb[9].mxu1 }
 0x107   :  { %v482_v3 = vadd.f32 %v1590_v6, %v273_v0  ;;  %v1228_v4 = vpop.f32.mrb[10].mxu0  ;;  %1269 = vmatprep.mubr.bf16.mxu1 %v540_v60  ;;  %v498_v10 = vadd.f32 %v1590_v6, %v337_v7  ;;  %v1244_v11 = vpop.f32.mrb[10].mxu1 }
 0x108   :  { %v485_v8 = vadd.f32 %v1228_v4, %v1590_v6  ;;  %v276_v9 = vpop.f32.mrb[11].mxu0  ;;  %1270 = vmatmul.mubr.bf16.gmra.mrb[20].mxu1 %v541_v58  ;;  %v532_v13 = vmax.f32 %v500_v5, 0.0  ;;  %v501_v14 = vadd.f32 %v1244_v11, %v1590_v6  ;;  %v340_v15 = vpop.f32.mrb[11].mxu1  ;;  %v516_v16 = vmax.f32 %v484_v63, 0.0  ;;  %v1384_v58 = vld [vmem:[%s1812_s5 + $0x38] sm:$0xff]  }
 0x109   :  { %v483_v12 = vadd.f32 %v1590_v6, %v276_v9  ;;  %v530_v18 = vmax.f32 %v498_v10, 0.0  ;;  %v499_v19 = vadd.f32 %v1590_v6, %v340_v15  ;;  %v514_v20 = vmax.f32 %v482_v3, 0.0 }
 0x10a   :  { %v517_v17 = vmax.f32 %v485_v8, 0.0  ;;  %v533_v22 = vmax.f32 %v501_v14, 0.0 }
 0x10b   :  { %v515_v21 = vmax.f32 %v483_v12, 0.0  ;;  %v531_v24 = vmax.f32 %v499_v19, 0.0 }
 0x10c   :  { %v543_v23 = vpack.c.bf16 %v517_v17, %v516_v16  ;;  %v551_v27 = vpack.c.bf16 %v533_v22, %v532_v13 }
 0x10d   :  { %v542_v25 = vpack.c.bf16 %v515_v21, %v514_v20  ;;  %v1231_v26 = vpop.f32.mrb[12].mxu0  ;;  %v550_v30 = vpack.c.bf16 %v531_v24, %v530_v18  ;;  %v1247_v31 = vpop.f32.mrb[12].mxu1 }
 0x10e   :  { %v488_v28 = vadd.f32 %v1231_v26, %v1590_v6  ;;  %v289_v29 = vpop.f32.mrb[13].mxu0  ;;  %v504_v35 = vadd.f32 %v1247_v31, %v1590_v6  ;;  %v353_v36 = vpop.f32.mrb[13].mxu1 }
 0x10f   :  { %v486_v32 = vadd.f32 %v1590_v6, %v289_v29  ;;  %v1232_v33 = vpop.f32.mrb[14].mxu0  ;;  %1273 = vmatprep.mubr.bf16.mxu1 %v542_v25  ;;  %v502_v40 = vadd.f32 %v1590_v6, %v353_v36  ;;  %v1248_v41 = vpop.f32.mrb[14].mxu1 }
 0x110   :  { %v489_v38 = vadd.f32 %v1232_v33, %v1590_v6  ;;  %v292_v39 = vpop.f32.mrb[15].mxu0  ;;  %1274 = vmatmul.mubr.bf16.gmra.mrb[24].mxu1 %v543_v23  ;;  %v536_v43 = vmax.f32 %v504_v35, 0.0  ;;  %v505_v44 = vadd.f32 %v1248_v41, %v1590_v6  ;;  %v356_v45 = vpop.f32.mrb[15].mxu1  ;;  %v520_v46 = vmax.f32 %v488_v28, 0.0 }
 0x111   :  { %v487_v42 = vadd.f32 %v1590_v6, %v292_v39  ;;  %v534_v48 = vmax.f32 %v502_v40, 0.0  ;;  %v503_v49 = vadd.f32 %v1590_v6, %v356_v45  ;;  %v518_v50 = vmax.f32 %v486_v32, 0.0  ;;  %v1383_v6 = vld [vmem:[%s1812_s5 + $0x30] sm:$0xff]  }
 0x112   :  { %v521_v47 = vmax.f32 %v489_v38, 0.0  ;;  %v537_v52 = vmax.f32 %v505_v44, 0.0  ;;  %1309 = vmatprep.subr.bf16.mxu0 %v1383_v6 }
 0x113   :  { %v519_v51 = vmax.f32 %v487_v42, 0.0  ;;  %v535_v54 = vmax.f32 %v503_v49, 0.0  ;;  %1310 = vmatpush3.bf16.msra.mxu0 %v1383_v6 }
 0x114   :  { %v545_v53 = vpack.c.bf16 %v521_v47, %v520_v46  ;;  %v553_v56 = vpack.c.bf16 %v537_v52, %v536_v43  ;;  %1311 = vmatprep.subr.bf16.mxu0 %v1384_v58 }
 0x115   :  { %v544_v55 = vpack.c.bf16 %v519_v51, %v518_v50  ;;  %v552_v57 = vpack.c.bf16 %v535_v54, %v534_v48 }
 0x117   :  { %1277 = vmatprep.mubr.bf16.mxu1 %v544_v55  ;;  %1312 = vmatpush3.bf16.msra.mxu0 %v1384_v58 }
 0x118   :  { %1278 = vmatmul.mubr.bf16.gmra.mrb[28].mxu1 %v545_v53 }
 0x119   :  { %1281 = vmatprep.mubr.bf16.mxu1 %v1603_v37 }
 0x120   :  { %1282 = vmatmul.mubr.bf16.gmra.mrb[32].mxu1 %v1600_v34  ;;  %v1642_v34 = vld [vmem:[%s1814_s4] ss:$0 sm:$0xff] }
 0x121   :  { %1285 = vmatprep.mubr.bf16.mxu1 %v548_v1 }
 0x128   :  { %1286 = vmatmul.mubr.bf16.gmra.mrb[36].mxu1 %v1612_v62 }
 0x129   :  { %1289 = vmatprep.mubr.bf16.mxu1 %v550_v30 }
 0x130   :  { %1290 = vmatmul.mubr.bf16.gmra.mrb[40].mxu1 %v551_v27 }
 0x131   :  { %1293 = vmatprep.mubr.bf16.mxu1 %v552_v57 }
 0x138   :  { %1294 = vmatmul.mubr.bf16.gmra.mrb[44].mxu1 %v553_v56 }
 0x1d3   :  { %v1267_v37 = vpop.f32.mrb[16].mxu1 }
 0x1d4   :  { %v668_v59 = vadd.f32 %v1267_v37, %v1642_v34  ;;  %v659_v60 = vpop.f32.mrb[17].mxu1 }
 0x1d5   :  { %v660_v61 = vadd.f32 %v1642_v34, %v659_v60  ;;  %v1268_v62 = vpop.f32.mrb[18].mxu1 }
 0x1d6   :  { %v671_v63 = vadd.f32 %v1268_v62, %v1642_v34  ;;  %v662_v0 = vpop.f32.mrb[19].mxu1  ;;  %v788_v2 = vmax.f32 %v668_v59, 0.0 }
 0x1d7   :  { %v663_v1 = vadd.f32 %v1642_v34, %v662_v0  ;;  %v786_v4 = vmax.f32 %v660_v61, 0.0 }
 0x1d8   :  { %v789_v3 = vmax.f32 %v671_v63, 0.0 }
 0x1d9   :  { %v787_v5 = vmax.f32 %v663_v1, 0.0 }
 0x1da   :  { %v819_v7 = vpack.c.bf16 %v789_v3, %v788_v2 }
 0x1db   :  { %v818_v8 = vpack.c.bf16 %v787_v5, %v786_v4  ;;  %v1271_v9 = vpop.f32.mrb[20].mxu1 }
 0x1dc   :  { %v684_v10 = vadd.f32 %v1271_v9, %v1642_v34  ;;  %v675_v11 = vpop.f32.mrb[21].mxu1 }
 0x1dd   :  { %v676_v12 = vadd.f32 %v1642_v34, %v675_v11  ;;  %v1272_v13 = vpop.f32.mrb[22].mxu1  ;;  %1313 = vmatprep.mubr.bf16.mxu0 %v818_v8 }
 0x1de   :  { %v687_v14 = vadd.f32 %v1272_v13, %v1642_v34  ;;  %v678_v15 = vpop.f32.mrb[23].mxu1  ;;  %1314 = vmatmul.mubr.bf16.vlgmr.msra.gmra.mrb[16].mxu0 %v819_v7  ;;  %v792_v17 = vmax.f32 %v684_v10, 0.0 }
 0x1df   :  { %v679_v16 = vadd.f32 %v1642_v34, %v678_v15  ;;  %v790_v19 = vmax.f32 %v676_v12, 0.0 }
 0x1e0   :  { %v793_v18 = vmax.f32 %v687_v14, 0.0 }
 0x1e1   :  { %v791_v20 = vmax.f32 %v679_v16, 0.0 }
 0x1e2   :  { %v821_v21 = vpack.c.bf16 %v793_v18, %v792_v17 }
 0x1e3   :  { %v820_v22 = vpack.c.bf16 %v791_v20, %v790_v19  ;;  %v1275_v23 = vpop.f32.mrb[24].mxu1 }
 0x1e4   :  { %v700_v24 = vadd.f32 %v1275_v23, %v1642_v34  ;;  %v691_v25 = vpop.f32.mrb[25].mxu1 }
 0x1e5   :  { %v692_v26 = vadd.f32 %v1642_v34, %v691_v25  ;;  %v1276_v27 = vpop.f32.mrb[26].mxu1  ;;  %1317 = vmatprep.mubr.bf16.mxu0 %v820_v22 }
 0x1e6   :  { %v703_v28 = vadd.f32 %v1276_v27, %v1642_v34  ;;  %v694_v29 = vpop.f32.mrb[27].mxu1  ;;  %1318 = vmatmul.mubr.bf16.gmra.mrb[20].mxu0 %v821_v21  ;;  %v796_v31 = vmax.f32 %v700_v24, 0.0 }
 0x1e7   :  { %v695_v30 = vadd.f32 %v1642_v34, %v694_v29  ;;  %v794_v33 = vmax.f32 %v692_v26, 0.0 }
 0x1e8   :  { %v797_v32 = vmax.f32 %v703_v28, 0.0 }
 0x1e9   :  { %v795_v35 = vmax.f32 %v695_v30, 0.0 }
 0x1ea   :  { %v823_v36 = vpack.c.bf16 %v797_v32, %v796_v31 }
 0x1eb   :  { %v822_v38 = vpack.c.bf16 %v795_v35, %v794_v33  ;;  %v1279_v39 = vpop.f32.mrb[28].mxu1 }
 0x1ec   :  { %v716_v40 = vadd.f32 %v1279_v39, %v1642_v34  ;;  %v707_v41 = vpop.f32.mrb[29].mxu1 }
 0x1ed   :  { %v708_v42 = vadd.f32 %v1642_v34, %v707_v41  ;;  %v1280_v43 = vpop.f32.mrb[30].mxu1  ;;  %1321 = vmatprep.mubr.bf16.mxu0 %v822_v38 }
 0x1ee   :  { %v719_v44 = vadd.f32 %v1280_v43, %v1642_v34  ;;  %v710_v45 = vpop.f32.mrb[31].mxu1  ;;  %1322 = vmatmul.mubr.bf16.gmra.mrb[24].mxu0 %v823_v36  ;;  %v800_v47 = vmax.f32 %v716_v40, 0.0 }
 0x1ef   :  { %v711_v46 = vadd.f32 %v1642_v34, %v710_v45  ;;  %v798_v49 = vmax.f32 %v708_v42, 0.0 }
 0x1f0   :  { %v801_v48 = vmax.f32 %v719_v44, 0.0 }
 0x1f1   :  { %v799_v50 = vmax.f32 %v711_v46, 0.0  ;;  %v1679_v46 = vld [vmem:[%s1815_s6] ss:$0 sm:$0xff] }
 0x1f2   :  { %v825_v51 = vpack.c.bf16 %v801_v48, %v800_v47 }
 0x1f3   :  { %v824_v52 = vpack.c.bf16 %v799_v50, %v798_v49  ;;  %v1283_v53 = vpop.f32.mrb[32].mxu1 }
 0x1f4   :  { %v732_v54 = vadd.f32 %v1283_v53, %v1642_v34  ;;  %v723_v55 = vpop.f32.mrb[33].mxu1 }
 0x1f5   :  { %v724_v56 = vadd.f32 %v1642_v34, %v723_v55  ;;  %v1284_v57 = vpop.f32.mrb[34].mxu1  ;;  %1325 = vmatprep.mubr.bf16.mxu0 %v824_v52 }
 0x1f6   :  { %v735_v6 = vadd.f32 %v1284_v57, %v1642_v34  ;;  %v726_v58 = vpop.f32.mrb[35].mxu1  ;;  %1326 = vmatmul.mubr.bf16.gmra.mrb[28].mxu0 %v825_v51  ;;  %v804_v59 = vmax.f32 %v732_v54, 0.0 }
 0x1f7   :  { %v727_v37 = vadd.f32 %v1642_v34, %v726_v58  ;;  %v802_v61 = vmax.f32 %v724_v56, 0.0 }
 0x1f8   :  { %v805_v60 = vmax.f32 %v735_v6, 0.0 }
 0x1f9   :  { %v803_v62 = vmax.f32 %v727_v37, 0.0 }
 0x1fa   :  { %v827_v63 = vpack.c.bf16 %v805_v60, %v804_v59 }
 0x1fb   :  { %v826_v0 = vpack.c.bf16 %v803_v62, %v802_v61  ;;  %v1287_v1 = vpop.f32.mrb[36].mxu1 }
 0x1fc   :  { %v748_v2 = vadd.f32 %v1287_v1, %v1642_v34  ;;  %v739_v3 = vpop.f32.mrb[37].mxu1 }
 0x1fd   :  { %v740_v4 = vadd.f32 %v1642_v34, %v739_v3  ;;  %v1288_v5 = vpop.f32.mrb[38].mxu1  ;;  %1329 = vmatprep.mubr.bf16.mxu0 %v826_v0 }
 0x1fe   :  { %v751_v7 = vadd.f32 %v1288_v5, %v1642_v34  ;;  %v742_v8 = vpop.f32.mrb[39].mxu1  ;;  %1330 = vmatmul.mubr.bf16.gmra.mrb[32].mxu0 %v827_v63  ;;  %v808_v10 = vmax.f32 %v748_v2, 0.0 }
 0x1ff   :  { %v743_v9 = vadd.f32 %v1642_v34, %v742_v8  ;;  %v806_v12 = vmax.f32 %v740_v4, 0.0 }
 0x200   :  { %v809_v11 = vmax.f32 %v751_v7, 0.0 }
 0x201   :  { %v807_v13 = vmax.f32 %v743_v9, 0.0 }
 0x202   :  { %v829_v14 = vpack.c.bf16 %v809_v11, %v808_v10 }
 0x203   :  { %v828_v15 = vpack.c.bf16 %v807_v13, %v806_v12  ;;  %v1291_v16 = vpop.f32.mrb[40].mxu1 }
 0x204   :  { %v764_v17 = vadd.f32 %v1291_v16, %v1642_v34  ;;  %v755_v18 = vpop.f32.mrb[41].mxu1 }
 0x205   :  { %v756_v19 = vadd.f32 %v1642_v34, %v755_v18  ;;  %v1292_v20 = vpop.f32.mrb[42].mxu1  ;;  %1333 = vmatprep.mubr.bf16.mxu0 %v828_v15 }
 0x206   :  { %v767_v21 = vadd.f32 %v1292_v20, %v1642_v34  ;;  %v758_v22 = vpop.f32.mrb[43].mxu1  ;;  %1334 = vmatmul.mubr.bf16.gmra.mrb[36].mxu0 %v829_v14  ;;  %v812_v24 = vmax.f32 %v764_v17, 0.0 }
 0x207   :  { %v759_v23 = vadd.f32 %v1642_v34, %v758_v22  ;;  %v810_v26 = vmax.f32 %v756_v19, 0.0 }
 0x208   :  { %v813_v25 = vmax.f32 %v767_v21, 0.0 }
 0x209   :  { %v811_v27 = vmax.f32 %v759_v23, 0.0 }
 0x20a   :  { %v831_v28 = vpack.c.bf16 %v813_v25, %v812_v24 }
 0x20b   :  { %v830_v29 = vpack.c.bf16 %v811_v27, %v810_v26  ;;  %v1295_v30 = vpop.f32.mrb[44].mxu1 }
 0x20c   :  { %v780_v31 = vadd.f32 %v1295_v30, %v1642_v34  ;;  %v771_v32 = vpop.f32.mrb[45].mxu1 }
 0x20d   :  { %v772_v33 = vadd.f32 %v1642_v34, %v771_v32  ;;  %v1296_v35 = vpop.f32.mrb[46].mxu1  ;;  %1337 = vmatprep.mubr.bf16.mxu0 %v830_v29 }
 0x20e   :  { %v783_v36 = vadd.f32 %v1296_v35, %v1642_v34  ;;  %v774_v38 = vpop.f32.mrb[47].mxu1  ;;  %1338 = vmatmul.mubr.bf16.gmra.mrb[40].mxu0 %v831_v28  ;;  %v816_v40 = vmax.f32 %v780_v31, 0.0 }
 0x20f   :  { %v775_v39 = vadd.f32 %v1642_v34, %v774_v38  ;;  %v814_v42 = vmax.f32 %v772_v33, 0.0 }
 0x210   :  { %v817_v41 = vmax.f32 %v783_v36, 0.0 }
 0x211   :  { %v815_v43 = vmax.f32 %v775_v39, 0.0 }
 0x212   :  { %v833_v44 = vpack.c.bf16 %v817_v41, %v816_v40 }
 0x213   :  { %v832_v45 = vpack.c.bf16 %v815_v43, %v814_v42 }
 0x215   :  { %1341 = vmatprep.mubr.bf16.mxu0 %v832_v45 }
 0x216   :  { %1342 = vmatmul.mubr.bf16.gmra.mrb[44].mxu0 %v833_v44 }
 0x2b1   :  { %v1315_v47 = vpop.f32.mrb[16].mxu0 }
 0x2b2   :  { %v948_v48 = vadd.f32 %v1315_v47, %v1679_v46  ;;  %v939_v49 = vpop.f32.mrb[17].mxu0 }
 0x2b3   :  { %v940_v50 = vadd.f32 %v1679_v46, %v939_v49  ;;  %v1316_v34 = vpop.f32.mrb[18].mxu0 }
 0x2b4   :  { %1068 = vst [vmem:[%s1816_s7 + $0x10] sm:$0xff] %v948_v48  ;;  %v951_v51 = vadd.f32 %v1316_v34, %v1679_v46  ;;  %v942_v52 = vpop.f32.mrb[19].mxu0 }
 0x2b5   :  { %1066 = vst [vmem:[%s1816_s7] sm:$0xff] %v940_v50  ;;  %v943_v53 = vadd.f32 %v1679_v46, %v942_v52 }
 0x2b6   :  { %1069 = vst [vmem:[%s1816_s7 + $0x18] sm:$0xff] %v951_v51 }
 0x2b7   :  { %1067 = vst [vmem:[%s1816_s7 + $0x8] sm:$0xff] %v943_v53 }
 0x2b9   :  { %v1319_v54 = vpop.f32.mrb[20].mxu0 }
 0x2ba   :  { %v964_v55 = vadd.f32 %v1319_v54, %v1679_v46  ;;  %v955_v56 = vpop.f32.mrb[21].mxu0 }
 0x2bb   :  { %v956_v57 = vadd.f32 %v1679_v46, %v955_v56  ;;  %v1320_v6 = vpop.f32.mrb[22].mxu0 }
 0x2bc   :  { %1072 = vst [vmem:[%s1816_s7 + $0x30] sm:$0xff] %v964_v55  ;;  %v967_v58 = vadd.f32 %v1320_v6, %v1679_v46  ;;  %v958_v37 = vpop.f32.mrb[23].mxu0 }
 0x2bd   :  { %1070 = vst [vmem:[%s1816_s7 + $0x20] sm:$0xff] %v956_v57  ;;  %v959_v59 = vadd.f32 %v1679_v46, %v958_v37 }
 0x2be   :  { %1073 = vst [vmem:[%s1816_s7 + $0x38] sm:$0xff] %v967_v58 }
 0x2bf   :  { %1071 = vst [vmem:[%s1816_s7 + $0x28] sm:$0xff] %v959_v59 }
 0x2c1   :  { %v1323_v60 = vpop.f32.mrb[24].mxu0 }
 0x2c2   :  { %v980_v61 = vadd.f32 %v1323_v60, %v1679_v46  ;;  %v971_v62 = vpop.f32.mrb[25].mxu0 }
 0x2c3   :  { %v972_v63 = vadd.f32 %v1679_v46, %v971_v62  ;;  %v1324_v0 = vpop.f32.mrb[26].mxu0 }
 0x2c4   :  { %1076 = vst [vmem:[%s1816_s7 + $0x50] sm:$0xff] %v980_v61  ;;  %v983_v1 = vadd.f32 %v1324_v0, %v1679_v46  ;;  %v974_v2 = vpop.f32.mrb[27].mxu0 }
 0x2c5   :  { %1074 = vst [vmem:[%s1816_s7 + $0x40] sm:$0xff] %v972_v63  ;;  %v975_v3 = vadd.f32 %v1679_v46, %v974_v2 }
 0x2c6   :  { %1077 = vst [vmem:[%s1816_s7 + $0x58] sm:$0xff] %v983_v1 }
 0x2c7   :  { %1075 = vst [vmem:[%s1816_s7 + $0x48] sm:$0xff] %v975_v3 }
 0x2c9   :  { %v1327_v4 = vpop.f32.mrb[28].mxu0 }
 0x2ca   :  { %v996_v5 = vadd.f32 %v1327_v4, %v1679_v46  ;;  %v987_v7 = vpop.f32.mrb[29].mxu0 }
 0x2cb   :  { %v988_v8 = vadd.f32 %v1679_v46, %v987_v7  ;;  %v1328_v9 = vpop.f32.mrb[30].mxu0 }
 0x2cc   :  { %1080 = vst [vmem:[%s1816_s7 + $0x70] sm:$0xff] %v996_v5  ;;  %v999_v10 = vadd.f32 %v1328_v9, %v1679_v46  ;;  %v990_v11 = vpop.f32.mrb[31].mxu0 }
 0x2cd   :  { %1078 = vst [vmem:[%s1816_s7 + $0x60] sm:$0xff] %v988_v8  ;;  %v991_v12 = vadd.f32 %v1679_v46, %v990_v11 }
 0x2ce   :  { %1081 = vst [vmem:[%s1816_s7 + $0x78] sm:$0xff] %v999_v10 }
 0x2cf   :  { %1079 = vst [vmem:[%s1816_s7 + $0x68] sm:$0xff] %v991_v12 }
 0x2d1   :  { %v1331_v13 = vpop.f32.mrb[32].mxu0 }
 0x2d2   :  { %v1012_v14 = vadd.f32 %v1331_v13, %v1679_v46  ;;  %v1003_v15 = vpop.f32.mrb[33].mxu0 }
 0x2d3   :  { %v1004_v16 = vadd.f32 %v1679_v46, %v1003_v15  ;;  %v1332_v17 = vpop.f32.mrb[34].mxu0 }
 0x2d4   :  { %1084 = vst [vmem:[%s1816_s7 + $0x90] sm:$0xff] %v1012_v14  ;;  %v1015_v18 = vadd.f32 %v1332_v17, %v1679_v46  ;;  %v1006_v19 = vpop.f32.mrb[35].mxu0 }
 0x2d5   :  { %1082 = vst [vmem:[%s1816_s7 + $0x80] sm:$0xff] %v1004_v16  ;;  %v1007_v20 = vadd.f32 %v1679_v46, %v1006_v19 }
 0x2d6   :  { %1085 = vst [vmem:[%s1816_s7 + $0x98] sm:$0xff] %v1015_v18 }
 0x2d7   :  { %1083 = vst [vmem:[%s1816_s7 + $0x88] sm:$0xff] %v1007_v20 }
 0x2d9   :  { %v1335_v21 = vpop.f32.mrb[36].mxu0 }
 0x2da   :  { %v1028_v22 = vadd.f32 %v1335_v21, %v1679_v46  ;;  %v1019_v23 = vpop.f32.mrb[37].mxu0 }
 0x2db   :  { %v1020_v24 = vadd.f32 %v1679_v46, %v1019_v23  ;;  %v1336_v25 = vpop.f32.mrb[38].mxu0 }
 0x2dc   :  { %1088 = vst [vmem:[%s1816_s7 + $0xb0] sm:$0xff] %v1028_v22  ;;  %v1031_v26 = vadd.f32 %v1336_v25, %v1679_v46  ;;  %v1022_v27 = vpop.f32.mrb[39].mxu0 }
 0x2dd   :  { %1086 = vst [vmem:[%s1816_s7 + $0xa0] sm:$0xff] %v1020_v24  ;;  %v1023_v28 = vadd.f32 %v1679_v46, %v1022_v27 }
 0x2de   :  { %1089 = vst [vmem:[%s1816_s7 + $0xb8] sm:$0xff] %v1031_v26 }
 0x2df   :  { %1087 = vst [vmem:[%s1816_s7 + $0xa8] sm:$0xff] %v1023_v28 }
 0x2e1   :  { %v1339_v29 = vpop.f32.mrb[40].mxu0 }
 0x2e2   :  { %v1044_v30 = vadd.f32 %v1339_v29, %v1679_v46  ;;  %v1035_v31 = vpop.f32.mrb[41].mxu0 }
 0x2e3   :  { %v1036_v32 = vadd.f32 %v1679_v46, %v1035_v31  ;;  %v1340_v33 = vpop.f32.mrb[42].mxu0 }
 0x2e4   :  { %1092 = vst [vmem:[%s1816_s7 + $0xd0] sm:$0xff] %v1044_v30  ;;  %v1047_v35 = vadd.f32 %v1340_v33, %v1679_v46  ;;  %v1038_v36 = vpop.f32.mrb[43].mxu0 }
 0x2e5   :  { %1090 = vst [vmem:[%s1816_s7 + $0xc0] sm:$0xff] %v1036_v32  ;;  %v1039_v38 = vadd.f32 %v1679_v46, %v1038_v36 }
 0x2e6   :  { %1093 = vst [vmem:[%s1816_s7 + $0xd8] sm:$0xff] %v1047_v35 }
 0x2e7   :  { %1091 = vst [vmem:[%s1816_s7 + $0xc8] sm:$0xff] %v1039_v38 }
 0x2e9   :  { %v1343_v39 = vpop.f32.mrb[44].mxu0 }
 0x2ea   :  { %v1060_v40 = vadd.f32 %v1343_v39, %v1679_v46  ;;  %v1051_v41 = vpop.f32.mrb[45].mxu0 }
 0x2eb   :  { %v1052_v42 = vadd.f32 %v1679_v46, %v1051_v41  ;;  %v1344_v43 = vpop.f32.mrb[46].mxu0 }
 0x2ec   :  { %1096 = vst [vmem:[%s1816_s7 + $0xf0] sm:$0xff] %v1060_v40  ;;  %v1063_v44 = vadd.f32 %v1344_v43, %v1679_v46  ;;  %v1054_v45 = vpop.f32.mrb[47].mxu0 }
 0x2ed   :  { %1094 = vst [vmem:[%s1816_s7 + $0xe0] sm:$0xff] %v1052_v42  ;;  %v1055_v47 = vadd.f32 %v1679_v46, %v1054_v45 }
 0x2ee   :  { %1097 = vst [vmem:[%s1816_s7 + $0xf8] sm:$0xff] %v1063_v44 }
 0x2ef   :  { %1095 = vst [vmem:[%s1816_s7 + $0xe8] sm:$0xff] %v1055_v47 }

</bundles_post_ra>
